<compile_context>
chip_gen: v5e
topology: v5e:2x2
jax: 0.10.0
libtpu: 0.0.40
codegen_flags: <defaults>
</compile_context>

<pallas_src>
import numpy as np
import jax
import jax.numpy as jnp
from jax.experimental import pallas as pl
from jax.experimental.pallas import tpu as pltpu


# ----------------------------- Pallas kernel ------------------------------ #
def tgs_aggregate_kernel(feats_ref, src_ref, w1_ref, w2_ref, biases_ref,
                         out_ref):
    D = out_ref.shape[-1]
    biases = biases_ref[...]                                    # (2, D) f32

    # linear_1 over the K-pre-summed concat(neigh, edge_time, edge) features.
    # relu(sum_k(x_k @ W1 + b1)) == relu((sum_k x_k) @ W1 + K*b1); the K*b1
    # term arrives pre-scaled in biases[0].
    s = jnp.maximum(
        jnp.dot(feats_ref[...], w1_ref[...],
                preferred_element_type=jnp.float32) + biases[0:1, :],
        0.0)                                                    # [tB, D] f32

    # linear_2 over concat(s, src_feat, src_time_emb); the constant source-
    # time projection cos(b_time)@W2_t + b2 is pre-folded into biases[1].
    # W2 halves are static slices of one stacked (2D, D) operand (ref views).
    out = (jnp.dot(s.astype(jnp.bfloat16), w2_ref[0:D, :],
                   preferred_element_type=jnp.float32)
           + jnp.dot(src_ref[...], w2_ref[D:2 * D, :],
                     preferred_element_type=jnp.float32)
           + biases[1:2, :])
    out_ref[...] = out.astype(out_ref.dtype)


# ------------------------------- tiling ----------------------------------- #
def _num_tensorcores():
    """2 for megacore parts (v7x / v4 / v5p), else 1.  Perf heuristic only."""
    try:
        kind = jax.devices()[0].device_kind.lower()
    except Exception:
        return 1
    return 2 if any(t in kind for t in ("v7", "v4", "v5p")) else 1


def _pick_tile(B, max_tB, n_cores):
    """Single big step on 1-TC chips; >=2 balanced steps on megacore chips;
    fixed multiple-of-8 tile + cdiv/padding for large B (no divisibility cliff)."""
    if B <= max_tB:
        if n_cores >= 2 and B >= 16 and B % 16 == 0:
            return B // 2                      # 2 balanced steps for 2 TCs
        return B                               # single step (v5e/v6e)
    tB = (max_tB // 8) * 8
    if n_cores >= 2:
        steps = -(-B // tB)
        if steps % 2:                          # keep an even step count
            tB = ((-(-B // (steps + 1)) + 7) // 8) * 8
    return max(tB, 8)


# ------------------------------- wrapper ----------------------------------- #
def tgs_aggregate(src_feat, neigh_emb, edge_feat, edge_deltas, params, lp,
                  out_dtype=jnp.float32, max_tB=512):
    """One graph-sum aggregation layer, tiled over the batch (source) axis."""
    B, K, D = neigh_emb.shape
    E = edge_feat.shape[-1]
    T = params["time_w"].shape[-1]
    bf, f32 = jnp.bfloat16, jnp.float32

    # --- wrapper-side algebra / layout (XLA side; keeps the kernel lean) ----
    # edge time encoding + K-neighbor pre-sum (fold through linear_1)
    time_emb = jnp.cos(edge_deltas[..., None].astype(f32)
                       * params["time_w"][0] + params["time_b"][0])   # [B,K,T]
    feats = jnp.concatenate(
        [neigh_emb.astype(f32).sum(axis=1),
         time_emb.sum(axis=1),
         edge_feat.astype(f32).sum(axis=1)], axis=-1).astype(bf)      # [B,D+T+E]
    src_bf = src_feat.astype(bf)                                      # [B, D]

    w1, b1, w2, b2 = lp["w1"], lp["b1"], lp["w2"], lp["b2"]
    w1_bf = w1.astype(bf)                                             # (D+T+E,D)
    w2_bf = w2[:2 * D].astype(bf)                                     # (2D, D)
    # fold row-invariant source-time projection into the bias; scale b1 by K
    src_time = jnp.cos(jnp.zeros((1, T), f32) * params["time_w"]
                       + params["time_b"])                            # (1, T)
    biases = jnp.concatenate([K * b1, src_time @ w2[2 * D:] + b2],
                             axis=0)                                  # (2, D)

    # --- tiling / batch-tail padding ---------------------------------------
    tB = _pick_tile(B, max_tB, _num_tensorcores())
    steps = -(-B // tB)
    Bp = steps * tB
    if Bp != B:
        pad = ((0, Bp - B), (0, 0))
        feats = jnp.pad(feats, pad)
        src_bf = jnp.pad(src_bf, pad)

    full = lambda i: (0, 0)
    out = pl.pallas_call(
        tgs_aggregate_kernel,
        out_shape=jax.ShapeDtypeStruct((Bp, D), out_dtype),
        grid_spec=pltpu.PrefetchScalarGridSpec(
            num_scalar_prefetch=0,
            grid=(steps,),
            in_specs=[
                pl.BlockSpec((tB, D + T + E), lambda i: (i, 0)),  # presum feats
                pl.BlockSpec((tB, D), lambda i: (i, 0)),          # src features
                pl.BlockSpec((D + T + E, D), full),               # W1
                pl.BlockSpec((2 * D, D), full),                   # [W2_sum;W2_src]
                pl.BlockSpec((2, D), full),                       # [K*b1; b2_eff]
            ],
            out_specs=pl.BlockSpec((tB, D), lambda i: (i, 0)),
        ),
        compiler_params=pltpu.CompilerParams(
            dimension_semantics=("parallel",)),
    )(feats, src_bf, w1_bf, w2_bf, biases)
    return out[:B] if Bp != B else out


# ------------------------------ glue / model ------------------------------ #
def make_params(key, D, E, T, n_layers):
    """Deterministic synthetic parameters (PyTorch-Linear-style uniform init)."""
    def linear(k, fan_in, fan_out):
        bound = 1.0 / np.sqrt(fan_in)
        kw, kb = jax.random.split(k)
        w = jax.random.uniform(kw, (fan_in, fan_out), jnp.float32, -bound, bound)
        b = jax.random.uniform(kb, (1, fan_out), jnp.float32, -bound, bound)
        return w, b

    # TimeEncoder: w = 1 / 10**linspace(0, 9, T), bias = 0 (TGN init).
    time_w = jnp.asarray(1.0 / 10 ** np.linspace(0, 9, T),
                         dtype=jnp.float32).reshape(1, T)
    time_b = jnp.zeros((1, T), jnp.float32)

    layers = []
    for lk in jax.random.split(key, n_layers):
        k1, k2 = jax.random.split(lk)
        w1, b1 = linear(k1, D + T + E, D)     # linear_1: cat(neigh,time,edge)->D
        w2, b2 = linear(k2, D + D + T, D)     # linear_2: cat(sum,src,time)->D
        layers.append(dict(w1=w1, b1=b1, w2=w2, b2=b2))
    return dict(time_w=time_w, time_b=time_b, layers=layers)


def deterministic_neighbors(sources, timestamps, N, n_edges, K):
    """Deterministic stand-in for get_neighbor_finder / get_temporal_neighbor."""
    # TODO(synk): real temporal neighbor sampling is data-dependent host-side
    # logic in TGN and has no clean Pallas equivalent; replaced by a fixed rule.
    k = jnp.arange(K)
    neigh = (sources[:, None] * 3 + k[None, :] + 1) % N               # [B, K]
    eidx = (sources[:, None] * 7 + k[None, :]) % n_edges              # [B, K]
    etimes = timestamps[:, None] - (k[None, :].astype(jnp.float32) + 1.0) * 0.5
    return neigh, eidx, etimes


def tgs_forward(node_feats, timestamps, edge_table, params, n_layers=2, K=8,
                aggregate_fn=tgs_aggregate):
    """Recursive graph-sum embedding (TGN GraphSumEmbedding.compute_embedding)."""
    N, D = node_feats.shape
    n_edges = edge_table.shape[0]

    def compute(sources, ts, layer):
        src_feat = node_feats[sources]                                # [B, D]
        if layer == 0:
            return src_feat
        neigh, eidx, etimes = deterministic_neighbors(sources, ts, N, n_edges, K)
        neigh_emb = compute(neigh.reshape(-1), jnp.repeat(ts, K), layer - 1)
        neigh_emb = neigh_emb.reshape(sources.shape[0], K, D)
        edge_feat = edge_table[eidx]                                  # [B, K, E]
        edge_deltas = ts[:, None] - etimes                            # [B, K]
        # bf16 for intermediate layers (next layer re-casts anyway), f32 final
        out_dtype = jnp.float32 if layer == n_layers else jnp.bfloat16
        return aggregate_fn(src_feat, neigh_emb, edge_feat, edge_deltas,
                            params, params["layers"][layer - 1],
                            out_dtype=out_dtype)

    # TODO(synk): original forward passes node features as source indices
    # (source_nodes=data.x); using node ids arange(N) as the sensible intent.
    sources = jnp.arange(N, dtype=jnp.int32)
    return compute(sources, timestamps, n_layers)


# --------------------------- pure-JAX reference ---------------------------- #
def aggregate_ref(src_feat, neigh_emb, edge_feat, edge_deltas, params, lp,
                  out_dtype=jnp.float32, max_tB=512):
    """Faithful f32, unfused per-neighbor math (original module semantics)."""
    del out_dtype, max_tB
    T = params["time_w"].shape[-1]
    hp = jax.lax.Precision.HIGHEST
    w1, b1, w2, b2 = lp["w1"], lp["b1"], lp["w2"], lp["b2"]

    time_emb = jnp.cos(edge_deltas[..., None] * params["time_w"][0]
                       + params["time_b"][0])                         # [B,K,T]
    x = jnp.concatenate([neigh_emb.astype(jnp.float32), time_emb,
                         edge_feat.astype(jnp.float32)], axis=-1)     # [B,K,*]
    h = jnp.einsum("bkf,fd->bkd", x, w1, precision=hp) + b1
    s = jnp.maximum(jnp.sum(h, axis=1), 0.0)                          # [B, D]
    src_time = jnp.cos(jnp.zeros((1, T)) * params["time_w"]
                       + params["time_b"])                            # [1, T]
    y = jnp.concatenate([s, src_feat.astype(jnp.float32),
                         jnp.broadcast_to(src_time, (s.shape[0], T))], axis=-1)
    return jnp.einsum("bf,fd->bd", y, w2, precision=hp) + b2


# ---------------------------------- main ----------------------------------- #
if __name__ == "__main__":
    N, D, E, T, K, L = 16, 32, 20, 5, 8, 2
    n_edges = 64

    key = jax.random.PRNGKey(0)
    k_feat, k_time, k_edge, k_param = jax.random.split(key, 4)
    node_feats = jax.random.normal(k_feat, (N, D), jnp.float32)
    timestamps = jax.random.uniform(k_time, (N,), jnp.float32, 1.0, 10.0)
    edge_table = jax.random.normal(k_edge, (n_edges, E), jnp.float32)
    params = make_params(k_param, D, E, T, L)

    out = tgs_forward(node_feats, timestamps, edge_table, params,
                      n_layers=L, K=K)
    out = jax.block_until_ready(out)

    ref = tgs_forward(node_feats, timestamps, edge_table, params,
                      n_layers=L, K=K, aggregate_fn=aggregate_ref)
    # tolerance covers bf16 MXU-operand rounding (2 stacked layers) vs f32 ref
    np.testing.assert_allclose(np.asarray(out), np.asarray(ref),
                               rtol=2e-2, atol=5e-2)
    assert out.shape == (N, D) and out.dtype == jnp.float32
    print("KERNEL_OK")
</pallas_src>

<mosaic_0001>
module attributes {stable_mosaic.version = 11 : i64} {
  func.func @tgs_aggregate_kernel(%arg0: i32, %arg1: memref<128x57xbf16, #tpu.memory_space<vmem>>, %arg2: memref<128x32xbf16, #tpu.memory_space<vmem>>, %arg3: memref<57x32xbf16, #tpu.memory_space<vmem>>, %arg4: memref<64x32xbf16, #tpu.memory_space<vmem>>, %arg5: memref<2x32xf32, #tpu.memory_space<vmem>>, %arg6: memref<128x32xbf16, #tpu.memory_space<vmem>>) attributes {dimension_semantics = [#tpu.dimension_semantics<parallel>], iteration_bounds = array<i64: 1>, scalar_prefetch = 0 : i64, scratch_operands = 0 : i64, tpu.core_type = #tpu.core_type<tc>, window_params = [{transform_indices = @transform_0, window_bounds = array<i64: 128, 57>}, {transform_indices = @transform_1, window_bounds = array<i64: 128, 32>}, {pipeline_mode = #tpu.pipeline_mode<synchronous>, transform_indices = @transform_2, window_bounds = array<i64: 57, 32>}, {pipeline_mode = #tpu.pipeline_mode<synchronous>, transform_indices = @transform_3, window_bounds = array<i64: 64, 32>}, {pipeline_mode = #tpu.pipeline_mode<synchronous>, transform_indices = @transform_4, window_bounds = array<i64: 2, 32>}, {transform_indices = @transform_5, window_bounds = array<i64: 128, 32>}]} {
    %c0 = arith.constant 0 : index
    %c0_0 = arith.constant 0 : index
    %0 = vector.load %arg5[%c0, %c0_0] : memref<2x32xf32, #tpu.memory_space<vmem>>, vector<2x32xf32>
    %c0_1 = arith.constant 0 : index
    %c0_2 = arith.constant 0 : index
    %1 = vector.load %arg1[%c0_1, %c0_2] : memref<128x57xbf16, #tpu.memory_space<vmem>>, vector<128x57xbf16>
    %c0_3 = arith.constant 0 : index
    %c0_4 = arith.constant 0 : index
    %2 = vector.load %arg3[%c0_3, %c0_4] : memref<57x32xbf16, #tpu.memory_space<vmem>>, vector<57x32xbf16>
    %cst = arith.constant dense<0.000000e+00> : vector<128x32xf32>
    %3 = tpu.matmul %1, %2, %cst {dimension_numbers = #tpu.dot_dimension_numbers<[1], [0], [0], [1], [0, 0, 1, 1], [], []>} : vector<128x57xbf16>, vector<57x32xbf16>, vector<128x32xf32> -> vector<128x32xf32>
    %4 = vector.extract_strided_slice %0 {offsets = [0, 0], sizes = [1, 32], strides = [1, 1]} : vector<2x32xf32> to vector<1x32xf32>
    %5 = vector.broadcast %4 : vector<1x32xf32> to vector<128x32xf32>
    %6 = arith.addf %3, %5 : vector<128x32xf32>
    %cst_5 = arith.constant 0.000000e+00 : f32
    %7 = vector.broadcast %cst_5 : f32 to vector<128x32xf32>
    %8 = arith.maximumf %6, %7 : vector<128x32xf32>
    %9 = arith.truncf %8 : vector<128x32xf32> to vector<128x32xbf16>
    %c0_6 = arith.constant 0 : index
    %c0_7 = arith.constant 0 : index
    %10 = vector.load %arg4[%c0_6, %c0_7] : memref<64x32xbf16, #tpu.memory_space<vmem>>, vector<32x32xbf16>
    %cst_8 = arith.constant dense<0.000000e+00> : vector<128x32xf32>
    %11 = tpu.matmul %9, %10, %cst_8 {dimension_numbers = #tpu.dot_dimension_numbers<[1], [0], [0], [1], [0, 0, 1, 1], [], []>} : vector<128x32xbf16>, vector<32x32xbf16>, vector<128x32xf32> -> vector<128x32xf32>
    %c0_9 = arith.constant 0 : index
    %c0_10 = arith.constant 0 : index
    %12 = vector.load %arg2[%c0_9, %c0_10] : memref<128x32xbf16, #tpu.memory_space<vmem>>, vector<128x32xbf16>
    %c32 = arith.constant 32 : index
    %c0_11 = arith.constant 0 : index
    %13 = vector.load %arg4[%c32, %c0_11] : memref<64x32xbf16, #tpu.memory_space<vmem>>, vector<32x32xbf16>
    %cst_12 = arith.constant dense<0.000000e+00> : vector<128x32xf32>
    %14 = tpu.matmul %12, %13, %cst_12 {dimension_numbers = #tpu.dot_dimension_numbers<[1], [0], [0], [1], [0, 0, 1, 1], [], []>} : vector<128x32xbf16>, vector<32x32xbf16>, vector<128x32xf32> -> vector<128x32xf32>
    %15 = arith.addf %11, %14 : vector<128x32xf32>
    %16 = vector.extract_strided_slice %0 {offsets = [1, 0], sizes = [1, 32], strides = [1, 1]} : vector<2x32xf32> to vector<1x32xf32>
    %17 = vector.broadcast %16 : vector<1x32xf32> to vector<128x32xf32>
    %18 = arith.addf %15, %17 : vector<128x32xf32>
    %19 = arith.truncf %18 : vector<128x32xf32> to vector<128x32xbf16>
    %c0_13 = arith.constant 0 : index
    %c0_14 = arith.constant 0 : index
    %20 = vector.load %arg6[%c0_13, %c0_14] : memref<128x32xbf16, #tpu.memory_space<vmem>>, vector<128x32xbf16>
    tpu.vector_store %arg6[%c0_13, %c0_14], %19 {strides = array<i32>} : memref<128x32xbf16, #tpu.memory_space<vmem>>, vector<128x32xbf16>,
    return
  }
  func.func @transform_0(%arg0: i32) -> (i32, i32) {
    %c0_i32 = arith.constant 0 : i32
    %c0_i32_0 = arith.constant 0 : i32
    return %arg0, %c0_i32 : i32, i32
  }
  func.func @transform_1(%arg0: i32) -> (i32, i32) {
    %c0_i32 = arith.constant 0 : i32
    %c0_i32_0 = arith.constant 0 : i32
    return %arg0, %c0_i32 : i32, i32
  }
  func.func @transform_2(%arg0: i32) -> (i32, i32) {
    %c0_i32 = arith.constant 0 : i32
    %c0_i32_0 = arith.constant 0 : i32
    %c0_i32_1 = arith.constant 0 : i32
    return %c0_i32, %c0_i32_0 : i32, i32
  }
  func.func @transform_3(%arg0: i32) -> (i32, i32) {
    %c0_i32 = arith.constant 0 : i32
    %c0_i32_0 = arith.constant 0 : i32
    %c0_i32_1 = arith.constant 0 : i32
    return %c0_i32, %c0_i32_0 : i32, i32
  }
  func.func @transform_4(%arg0: i32) -> (i32, i32) {
    %c0_i32 = arith.constant 0 : i32
    %c0_i32_0 = arith.constant 0 : i32
    %c0_i32_1 = arith.constant 0 : i32
    return %c0_i32, %c0_i32_0 : i32, i32
  }
  func.func @transform_5(%arg0: i32) -> (i32, i32) {
    %c0_i32 = arith.constant 0 : i32
    %c0_i32_0 = arith.constant 0 : i32
    return %arg0, %c0_i32 : i32, i32
  }
}

</mosaic_0001>

<bundles_post_ra>
// kernel: tpu_custom_call.1
= control target key start
LH: loop header
LB: loop body
LE: loop exit
PB: predicated region body
PF: predicated region fallthrough
CT: control target
= control target key end

     0   :  { %vm135_vm0 = vcmask 1043456   ;;  %vm136_vm1 = vcmask 1044480   ;;  %v657_v2 = vmov 65535   ;;  %vm110_vm2 = vcmask 465920   ;;  %s894_s2 = inlined_call_operand.vmem [shape: bf16[57,32], index: 2, kind: input, shape index: {}]   ;;  %s895_s0 = inlined_call_operand.vmem [shape: bf16[128,57], index: 0, kind: input, shape index: {}]   ;;  %s896_s3 = inlined_call_operand.vmem [shape: bf16[64,32], index: 3, kind: input, shape index: {}]   ;;  %s897_s1 = inlined_call_operand.vmem [shape: bf16[128,32], index: 1, kind: input, shape index: {}]   ;;  %s898_s4 = inlined_call_operand.vmem [shape: f32[2,32], index: 4, kind: input, shape index: {}]   ;;  %s899_s5 = inlined_call_operand.vmem [shape: bf16[128,32], index: 5, kind: output, shape index: {}]  }
   0x1   :  { %v550_v0 = vld [vmem:[%s894_s2 + $0x18] sm:$0xf]  ;;  %v635_v1 = vld [vmem:[%s894_s2 + $0x18] sm:$0x10]  ;;  %v137_v3 = vsel %vm135_vm0, 4294967295, %v657_v2  ;;  %v634_v7 = vld [vmem:[%s894_s2 + $0x10] sm:$0xff] }
   0x2   :  { %v551_v4 = vor.u32 %v635_v1, %v550_v0  ;;  %v138_v5 = vsel %vm136_vm1, %v137_v3, 0  ;;  %v633_v8 = vld [vmem:[%s894_s2 + $0x8] sm:$0xff]  ;;  %v632_v9 = vld [vmem:[%s894_s2] sm:$0xff]  ;;  %v630_v12 = vld [vmem:[%s895_s0 + $0x30] sm:$0xff]  ;;  %vm291_vm3 = vcmask 261120   ;;  %vm483_vm4 = vcmask 257024  }
   0x3   :  { %v624_v10 = vld [vmem:[%s895_s0] sm:$0xff]  ;;  %v625_v11 = vld [vmem:[%s895_s0 + $0x8] sm:$0xff]  ;;  %v626_v13 = vld [vmem:[%s895_s0 + $0x10] sm:$0xff] }
   0x4   :  { %v140_v6 = vand.u32 %v551_v4, %v138_v5  ;;  %v631_v14 = vld [vmem:[%s895_s0 + $0x38] sm:$0xff]  ;;  %v628_v16 = vld [vmem:[%s895_s0 + $0x20] sm:$0xff]  ;;  %v629_v17 = vld [vmem:[%s895_s0 + $0x28] sm:$0xff] }
   0x5   :  { %v627_v15 = vld [vmem:[%s895_s0 + $0x18] sm:$0xff]  ;;  %v637_v19 = vld [vmem:[%s896_s3 + $0x8] sm:$0xff]  ;;  %v646_v20 = vld [vmem:[%s896_s3 + $0x10] sm:$0xff] }
   0x6   :  { %146 = vmatpush.bf16.msra.mxu0 %v140_v6  ;;  %648 = vmatpush.bf16.msra.mxu3 %v140_v6  ;;  %v647_v18 = vld [vmem:[%s896_s3 + $0x18] sm:$0xff]  ;;  %v636_v21 = vld [vmem:[%s896_s3] sm:$0xff]  ;;  %v639_v23 = vld [vmem:[%s897_s1 + $0x8] sm:$0xff] }
   0x7   :  { %322 = vmatpush.bf16.msra.mxu1 %v647_v18  ;;  %407 = vmatpush.bf16.msra.mxu2 %v637_v19  ;;  %v638_v22 = vld [vmem:[%s897_s1] sm:$0xff]  ;;  %v640_v32 = vld [vmem:[%s897_s1 + $0x10] sm:$0xff]  ;;  %v641_v41 = vld [vmem:[%s897_s1 + $0x18] sm:$0xff] }
   0x8   :  { %v758_v24 = vld [vmem:[%s898_s4] sm:$0x3]  ;;  %v645_v48 = vld [vmem:[%s897_s1 + $0x38] sm:$0xff] }
   0x9   :  { %v761_v26 = vperm.slane %v758_v24, 0  ;;  %v642_v57 = vld [vmem:[%s897_s1 + $0x20] sm:$0xff] }
   0xa   :  { %147 = vmatpush.bf16.msra.mxu0 %v634_v7  ;;  %649 = vmatpush.bf16.msra.mxu3 %v634_v7  ;;  %v643_v7 = vld [vmem:[%s897_s1 + $0x28] sm:$0xff] }
   0xb   :  { %323 = vmatpush.bf16.msra.mxu1 %v646_v20  ;;  %408 = vmatpush.bf16.msra.mxu2 %v636_v21 }
   0xe   :  { %148 = vmatpush.bf16.msra.mxu0 %v633_v8  ;;  %650 = vmatpush.bf16.msra.mxu3 %v633_v8 }
   0xf   :  { %600 = vmatmul.msk.bf16.vlgmr.msra.gmra.mxu1 %vm291_vm3, %v638_v22 }
  0x12   :  { %149 = vmatpush.bf16.msra.mxu0 %v632_v9  ;;  %651 = vmatpush.bf16.msra.mxu3 %v632_v9 }
  0x15   :  { %552 = vmatmul.msk.bf16.vlgmr.msra.gmra.mxu0 %vm110_vm2, %v624_v10  ;;  %558 = vmatmul.msk.bf16.vlgmr.msra.gmra.mxu3 %vm110_vm2, %v630_v12 }
  0x16   :  { %652 = vmatpush.bf16.msrb.mxu3 %v647_v18 }
  0x1a   :  { %653 = vmatpush.bf16.msrb.mxu3 %v646_v20 }
  0x1e   :  { %654 = vmatpush.bf16.msra.mxu3 %v637_v19 }
  0x1f   :  { %601 = vmatmul.msk.bf16.gmra.mxu1 %vm291_vm3, %v639_v23 }
  0x22   :  { %655 = vmatpush.bf16.msra.mxu3 %v636_v21 }
  0x25   :  { %553 = vmatmul.msk.bf16.gmra.mxu0 %vm110_vm2, %v625_v11  ;;  %559 = vmatmul.msk.bf16.gmra.mxu3 %vm110_vm2, %v631_v14 }
  0x2f   :  { %602 = vmatmul.msk.bf16.gmra.mxu1 %vm291_vm3, %v640_v32 }
  0x35   :  { %554 = vmatmul.msk.bf16.gmra.mxu0 %vm110_vm2, %v626_v13  ;;  %607 = vmatmul.msk.bf16.vlgmr.msrb.gmra.mxu3 %vm291_vm3, %v645_v48  ;;  %v644_v13 = vld [vmem:[%s897_s1 + $0x30] sm:$0xff] }
  0x3f   :  { %603 = vmatmul.msk.bf16.gmra.mxu1 %vm291_vm3, %v641_v41 }
  0x45   :  { %555 = vmatmul.msk.bf16.gmra.mxu0 %vm110_vm2, %v627_v15 }
  0x4f   :  { %604 = vmatmul.msk.bf16.gmra.mxu1 %vm291_vm3, %v642_v57 }
  0x55   :  { %556 = vmatmul.msk.bf16.gmra.mxu0 %vm110_vm2, %v628_v16 }
  0x5f   :  { %605 = vmatmul.msk.bf16.gmra.mxu1 %vm291_vm3, %v643_v7 }
  0x65   :  { %557 = vmatmul.msk.bf16.gmra.mxu0 %vm110_vm2, %v629_v17 }
  0x6f   :  { %606 = vmatmul.msk.bf16.gmra.mxu1 %vm291_vm3, %v644_v13 }
  0x92   :  { %v151_v25 = vpop.f32.mrf.mxu0 }
  0x93   :  { %v152_v27 = vadd.f32 %v151_v25, %v761_v26  ;;  %v325_v25 = vpop.f32.mrf.mxu1 }
  0x95   :  { %v191_v30 = vmax.f32 %v152_v27, 0.0 }
  0x98   :  { %v181_v37 = vpop.f32.mrf.mxu3 }
  0x99   :  { %v182_v43 = vadd.f32 %v181_v37, %v761_v26 }
  0x9a   :  { %v153_v28 = vpop.f32.mrf.mxu0 }
  0x9b   :  { %v154_v29 = vadd.f32 %v153_v28, %v761_v26  ;;  %v203_v46 = vmax.f32 %v182_v43, 0.0  ;;  %v327_v27 = vpop.f32.mrf.mxu1 }
  0x9d   :  { %v192_v31 = vmax.f32 %v154_v29, 0.0  ;;  %v812_v29 = vperm.slane %v758_v24, 1 }
  0x9f   :  { %v207_v33 = vpack.c.bf16 %v192_v31, %v191_v30 }
  0xa0   :  { %v183_v45 = vpop.f32.mrf.mxu3 }
  0xa1   :  { %616 = vmatmul.msk.bf16.vlgmr.msra.gmra.mxu2 %vm291_vm3, %v207_v33  ;;  %v184_v47 = vadd.f32 %v183_v45, %v761_v26 }
  0xa2   :  { %v156_v34 = vpop.f32.mrf.mxu0 }
  0xa3   :  { %v157_v35 = vadd.f32 %v156_v34, %v761_v26  ;;  %v204_v49 = vmax.f32 %v184_v47, 0.0  ;;  %v330_v28 = vpop.f32.mrf.mxu1 }
  0xa5   :  { %v193_v39 = vmax.f32 %v157_v35, 0.0  ;;  %v213_v51 = vpack.c.bf16 %v204_v49, %v203_v46 }
  0xa8   :  { %v186_v53 = vpop.f32.mrf.mxu3 }
  0xa9   :  { %v187_v59 = vadd.f32 %v186_v53, %v761_v26 }
  0xaa   :  { %v158_v36 = vpop.f32.mrf.mxu0 }
  0xab   :  { %v159_v38 = vadd.f32 %v158_v36, %v761_v26  ;;  %v205_v62 = vmax.f32 %v187_v59, 0.0  ;;  %v332_v33 = vpop.f32.mrf.mxu1 }
  0xad   :  { %v194_v40 = vmax.f32 %v159_v38, 0.0 }
  0xaf   :  { %v208_v42 = vpack.c.bf16 %v194_v40, %v193_v39 }
  0xb0   :  { %v188_v61 = vpop.f32.mrf.mxu3 }
  0xb1   :  { %617 = vmatmul.msk.bf16.gmra.mxu2 %vm291_vm3, %v208_v42  ;;  %v189_v63 = vadd.f32 %v188_v61, %v761_v26 }
  0xb2   :  { %v161_v44 = vpop.f32.mrf.mxu0 }
  0xb3   :  { %v162_v50 = vadd.f32 %v161_v44, %v761_v26  ;;  %v206_v0 = vmax.f32 %v189_v63, 0.0  ;;  %v335_v38 = vpop.f32.mrf.mxu1 }
  0xb5   :  { %v195_v55 = vmax.f32 %v162_v50, 0.0  ;;  %v214_v1 = vpack.c.bf16 %v206_v0, %v205_v62 }
  0xb7   :  { %623 = vmatmul.msk.bf16.vlgmr.msra.gmra.mxu3 %vm291_vm3, %v214_v1 }
  0xb8   :  { %v360_v42 = vpop.f32.mrf.mxu3 }
  0xba   :  { %v163_v52 = vpop.f32.mrf.mxu0 }
  0xbb   :  { %v164_v54 = vadd.f32 %v163_v52, %v761_v26  ;;  %v337_v44 = vpop.f32.mrf.mxu1 }
  0xbd   :  { %v196_v56 = vmax.f32 %v164_v54, 0.0 }
  0xbf   :  { %v209_v58 = vpack.c.bf16 %v196_v56, %v195_v55 }
  0xc0   :  { %v362_v48 = vpop.f32.mrf.mxu3 }
  0xc1   :  { %618 = vmatmul.msk.bf16.gmra.mxu2 %vm291_vm3, %v209_v58 }
  0xc2   :  { %v166_v60 = vpop.f32.mrf.mxu0 }
  0xc3   :  { %v167_v2 = vadd.f32 %v166_v60, %v761_v26 }
  0xc5   :  { %v197_v5 = vmax.f32 %v167_v2, 0.0 }
  0xca   :  { %v168_v3 = vpop.f32.mrf.mxu0 }
  0xcb   :  { %v169_v4 = vadd.f32 %v168_v3, %v761_v26 }
  0xcd   :  { %v198_v6 = vmax.f32 %v169_v4, 0.0 }
  0xcf   :  { %v210_v8 = vpack.c.bf16 %v198_v6, %v197_v5 }
  0xd1   :  { %619 = vmatmul.msk.bf16.gmra.mxu2 %vm291_vm3, %v210_v8 }
  0xd2   :  { %v171_v9 = vpop.f32.mrf.mxu0 }
  0xd3   :  { %v172_v10 = vadd.f32 %v171_v9, %v761_v26 }
  0xd5   :  { %v199_v14 = vmax.f32 %v172_v10, 0.0 }
  0xda   :  { %v173_v11 = vpop.f32.mrf.mxu0 }
  0xdb   :  { %v174_v12 = vadd.f32 %v173_v11, %v761_v26 }
  0xdd   :  { %v200_v15 = vmax.f32 %v174_v12, 0.0 }
  0xdf   :  { %v211_v16 = vpack.c.bf16 %v200_v15, %v199_v14 }
  0xe1   :  { %620 = vmatmul.msk.bf16.gmra.mxu2 %vm291_vm3, %v211_v16 }
  0xe2   :  { %v176_v17 = vpop.f32.mrf.mxu0 }
  0xe3   :  { %v177_v18 = vadd.f32 %v176_v17, %v761_v26 }
  0xe5   :  { %v201_v21 = vmax.f32 %v177_v18, 0.0 }
  0xea   :  { %v178_v19 = vpop.f32.mrf.mxu0 }
  0xeb   :  { %v179_v20 = vadd.f32 %v178_v19, %v761_v26 }
  0xed   :  { %v202_v22 = vmax.f32 %v179_v20, 0.0 }
  0xef   :  { %v212_v23 = vpack.c.bf16 %v202_v22, %v201_v21 }
  0xf1   :  { %621 = vmatmul.msk.bf16.gmra.mxu2 %vm291_vm3, %v212_v23 }
 0x101   :  { %622 = vmatmul.msk.bf16.gmra.mxu2 %vm291_vm3, %v213_v51  ;;  %v340_v51 = vpop.f32.mrf.mxu1 }
 0x109   :  { %v342_v58 = vpop.f32.mrf.mxu1 }
 0x111   :  { %v345_v6 = vpop.f32.mrf.mxu1 }
 0x119   :  { %v347_v12 = vpop.f32.mrf.mxu1 }
 0x121   :  { %v350_v19 = vpop.f32.mrf.mxu1 }
 0x124   :  { %v410_v30 = vpop.f32.mrf.mxu2 }
 0x125   :  { %v411_v31 = vadd.f32 %v410_v30, %v325_v25 }
 0x127   :  { %v451_v32 = vadd.f32 %v812_v29, %v411_v31 }
 0x129   :  { %v467_v26 = vpack.c.bf16 %v451_v32, %v451_v32 }
 0x12b   :  { %484 = vst.msk [vmem:[%s899_s5] sm:$0xf] %vm483_vm4, %v467_v26 }
 0x12c   :  { %v412_v34 = vpop.f32.mrf.mxu2 }
 0x12d   :  { %v413_v35 = vadd.f32 %v412_v34, %v327_v27  ;;  %v352_v27 = vpop.f32.mrf.mxu1 }
 0x12f   :  { %v452_v36 = vadd.f32 %v812_v29, %v413_v35 }
 0x131   :  { %v468_v37 = vpack.c.bf16 %v452_v36, %v452_v36 }
 0x133   :  { %485 = vst.msk [vmem:[%s899_s5 + $0x4] sm:$0xf] %vm483_vm4, %v468_v37 }
 0x134   :  { %v415_v24 = vpop.f32.mrf.mxu2 }
 0x135   :  { %v416_v39 = vadd.f32 %v415_v24, %v330_v28  ;;  %v355_v26 = vpop.f32.mrf.mxu1 }
 0x137   :  { %v453_v40 = vadd.f32 %v812_v29, %v416_v39 }
 0x139   :  { %v469_v41 = vpack.c.bf16 %v453_v40, %v453_v40 }
 0x13a   :  { %v445_v56 = vpop.f32.mrf.mxu3 }
 0x13b   :  { %486 = vst.msk [vmem:[%s899_s5 + $0x8] sm:$0xf] %vm483_vm4, %v469_v41  ;;  %v446_v60 = vadd.f32 %v445_v56, %v360_v42 }
 0x13c   :  { %v417_v43 = vpop.f32.mrf.mxu2 }
 0x13d   :  { %v418_v45 = vadd.f32 %v417_v43, %v332_v33  ;;  %v465_v63 = vadd.f32 %v812_v29, %v446_v60 }
 0x13f   :  { %v454_v46 = vadd.f32 %v812_v29, %v418_v45  ;;  %v481_v3 = vpack.c.bf16 %v465_v63, %v465_v63 }
 0x141   :  { %v470_v47 = vpack.c.bf16 %v454_v46, %v454_v46  ;;  %498 = vst.msk [vmem:[%s899_s5 + $0x38] sm:$0xf] %vm483_vm4, %v481_v3 }
 0x142   :  { %v447_v0 = vpop.f32.mrf.mxu3 }
 0x143   :  { %487 = vst.msk [vmem:[%s899_s5 + $0xc] sm:$0xf] %vm483_vm4, %v470_v47  ;;  %v448_v1 = vadd.f32 %v447_v0, %v362_v48 }
 0x144   :  { %v420_v49 = vpop.f32.mrf.mxu2 }
 0x145   :  { %v421_v50 = vadd.f32 %v420_v49, %v335_v38  ;;  %v466_v4 = vadd.f32 %v812_v29, %v448_v1  ;;  %v357_v38 = vpop.f32.mrf.mxu1 }
 0x147   :  { %v455_v52 = vadd.f32 %v812_v29, %v421_v50  ;;  %v482_v7 = vpack.c.bf16 %v466_v4, %v466_v4 }
 0x149   :  { %v471_v53 = vpack.c.bf16 %v455_v52, %v455_v52  ;;  %499 = vst.msk [vmem:[%s899_s5 + $0x3c] sm:$0xf] %vm483_vm4, %v482_v7 }
 0x14b   :  { %488 = vst.msk [vmem:[%s899_s5 + $0x10] sm:$0xf] %vm483_vm4, %v471_v53 }
 0x14c   :  { %v422_v54 = vpop.f32.mrf.mxu2 }
 0x14d   :  { %v423_v55 = vadd.f32 %v422_v54, %v337_v44 }
 0x14f   :  { %v456_v57 = vadd.f32 %v812_v29, %v423_v55 }
 0x151   :  { %v472_v59 = vpack.c.bf16 %v456_v57, %v456_v57 }
 0x153   :  { %489 = vst.msk [vmem:[%s899_s5 + $0x14] sm:$0xf] %vm483_vm4, %v472_v59 }
 0x154   :  { %v425_v61 = vpop.f32.mrf.mxu2 }
 0x155   :  { %v426_v62 = vadd.f32 %v425_v61, %v340_v51 }
 0x157   :  { %v457_v2 = vadd.f32 %v812_v29, %v426_v62 }
 0x159   :  { %v473_v5 = vpack.c.bf16 %v457_v2, %v457_v2 }
 0x15b   :  { %490 = vst.msk [vmem:[%s899_s5 + $0x18] sm:$0xf] %vm483_vm4, %v473_v5 }
 0x15c   :  { %v427_v8 = vpop.f32.mrf.mxu2 }
 0x15d   :  { %v428_v9 = vadd.f32 %v427_v8, %v342_v58 }
 0x15f   :  { %v458_v10 = vadd.f32 %v812_v29, %v428_v9 }
 0x161   :  { %v474_v11 = vpack.c.bf16 %v458_v10, %v458_v10 }
 0x163   :  { %491 = vst.msk [vmem:[%s899_s5 + $0x1c] sm:$0xf] %vm483_vm4, %v474_v11 }
 0x164   :  { %v430_v13 = vpop.f32.mrf.mxu2 }
 0x165   :  { %v431_v14 = vadd.f32 %v430_v13, %v345_v6 }
 0x167   :  { %v459_v15 = vadd.f32 %v812_v29, %v431_v14 }
 0x169   :  { %v475_v16 = vpack.c.bf16 %v459_v15, %v459_v15 }
 0x16b   :  { %492 = vst.msk [vmem:[%s899_s5 + $0x20] sm:$0xf] %vm483_vm4, %v475_v16 }
 0x16c   :  { %v432_v17 = vpop.f32.mrf.mxu2 }
 0x16d   :  { %v433_v18 = vadd.f32 %v432_v17, %v347_v12 }
 0x16f   :  { %v460_v20 = vadd.f32 %v812_v29, %v433_v18 }
 0x171   :  { %v476_v21 = vpack.c.bf16 %v460_v20, %v460_v20 }
 0x173   :  { %493 = vst.msk [vmem:[%s899_s5 + $0x24] sm:$0xf] %vm483_vm4, %v476_v21 }
 0x174   :  { %v435_v22 = vpop.f32.mrf.mxu2 }
 0x175   :  { %v436_v23 = vadd.f32 %v435_v22, %v350_v19 }
 0x177   :  { %v461_v25 = vadd.f32 %v812_v29, %v436_v23 }
 0x179   :  { %v477_v28 = vpack.c.bf16 %v461_v25, %v461_v25 }
 0x17b   :  { %494 = vst.msk [vmem:[%s899_s5 + $0x28] sm:$0xf] %vm483_vm4, %v477_v28 }
 0x17c   :  { %v437_v30 = vpop.f32.mrf.mxu2 }
 0x17d   :  { %v438_v31 = vadd.f32 %v437_v30, %v352_v27 }
 0x17f   :  { %v462_v32 = vadd.f32 %v812_v29, %v438_v31 }
 0x181   :  { %v478_v33 = vpack.c.bf16 %v462_v32, %v462_v32 }
 0x183   :  { %495 = vst.msk [vmem:[%s899_s5 + $0x2c] sm:$0xf] %vm483_vm4, %v478_v33 }
 0x184   :  { %v440_v34 = vpop.f32.mrf.mxu2 }
 0x185   :  { %v441_v35 = vadd.f32 %v440_v34, %v355_v26 }
 0x187   :  { %v463_v36 = vadd.f32 %v812_v29, %v441_v35 }
 0x189   :  { %v479_v37 = vpack.c.bf16 %v463_v36, %v463_v36 }
 0x18b   :  { %496 = vst.msk [vmem:[%s899_s5 + $0x30] sm:$0xf] %vm483_vm4, %v479_v37 }
 0x18c   :  { %v442_v24 = vpop.f32.mrf.mxu2 }
 0x18d   :  { %v443_v39 = vadd.f32 %v442_v24, %v357_v38 }
 0x18f   :  { %v464_v40 = vadd.f32 %v812_v29, %v443_v39 }
 0x191   :  { %v480_v41 = vpack.c.bf16 %v464_v40, %v464_v40 }
 0x193   :  { %497 = vst.msk [vmem:[%s899_s5 + $0x34] sm:$0xf] %vm483_vm4, %v480_v41 }

</bundles_post_ra>
